<compile_context>
chip_gen: v7x
topology: tpu7x:2x2x1
jax: 0.10.0
libtpu: 0.0.40
codegen_flags: <defaults>
</compile_context>

<pallas_src>
import functools

import jax
import jax.numpy as jnp
from jax.experimental import pallas as pl
from jax.experimental.pallas import tpu as pltpu

# Hyper-parameters (stand-ins for hyperPara.*).
Dim_G_Input = 32
Dim_Hidden = 32
Dim_G_Output = 2

_PACK = 128 // Dim_Hidden   # rows packed per 128-lane vreg row (= 4)


def _round_up(x, m):
    return ((x + m - 1) // m) * m


def generator_kernel(x_ref, w_ref, b_ref, w4_ref, b4_ref, o_ref):
    """Fused 4-layer MLP on one packed batch tile.

    x_ref  : (tile_r, 128)   f32   -- 4 batch rows packed per vreg row
    w_ref  : (3, 128, 128)   f32   -- block-diagonal hidden weights
    b_ref  : (3, 1, 128)     f32   -- hidden biases, tiled 4x along lanes
    w4_ref : (128, 8)        f32   -- block-diagonal output weights
    b4_ref : (1, 8)          f32
    o_ref  : (tile_r, 8)     f32   -- bit-identical to (tile, 2) row-major
    """
    h = jnp.dot(x_ref[...], w_ref[0],
                preferred_element_type=jnp.float32) + b_ref[0]
    h = jnp.maximum(h, 0.0)

    h = jnp.dot(h, w_ref[1], preferred_element_type=jnp.float32) + b_ref[1]
    h = jnp.maximum(h, 0.0)

    h = jnp.dot(h, w_ref[2], preferred_element_type=jnp.float32) + b_ref[2]
    h = jnp.maximum(h, 0.0)

    out = jnp.dot(h, w4_ref[...], preferred_element_type=jnp.float32) + b4_ref[...]
    o_ref[...] = jnp.tanh(out).astype(o_ref.dtype)


@functools.partial(jax.jit, static_argnames=("batch_tile",))
def generator_forward(noise, params, *, batch_tile=4096):
    """noise: (B, Dim_G_Input). params: 4 x (W (in,out), b (1,out)), f32."""
    (w1, b1), (w2, b2), (w3, b3), (w4, b4) = params
    orig_dtype = noise.dtype
    B, Din = noise.shape
    H = w1.shape[1]
    Dout = w4.shape[1]
    assert Din == Dim_G_Input and H == Dim_Hidden and Dout == Dim_G_Output
    assert _PACK * Din == 128 and _PACK * H == 128

    # Tile selection (rows of the original batch). `tile` must be a multiple
    # of 32 so the packed tile (tile // 4) keeps an 8-aligned sublane count.
    #  * B <= batch_tile: split into exactly 2 tiles so grid >= 2 and the
    #    "parallel" batch axis shards across v7x's two TensorCores.
    #  * otherwise: big batch tiles amortize the ~0.35 us per-step overhead.
    #    TODO(synk): prefer a tile that divides B exactly to avoid padded-row
    #    compute on very ragged batches.
    if B <= batch_tile:
        tile = _round_up(pl.cdiv(B, 2), 32)
    else:
        tile = _round_up(batch_tile, 32)
    padded_B = _round_up(B, tile)
    grid = padded_B // tile
    tile_r = tile // _PACK
    rows = padded_B // _PACK

    # Stream the noise in f32 (no extra cast/HBM pass); pad ragged batches and
    # pack 4 rows per 128-lane row (free, contiguous reshape).
    x = noise.astype(jnp.float32)
    if padded_B != B:
        x = jnp.pad(x, ((0, padded_B - B), (0, 0)))
    x = x.reshape(rows, _PACK * Din)

    # Block-diagonal weight packing: each layer becomes a K=N=128 contraction.
    eye = jnp.eye(_PACK, dtype=jnp.float32)
    w_stack = jnp.stack(
        [jnp.kron(eye, w.astype(jnp.float32)) for w in (w1, w2, w3)])      # (3,128,128)
    b_stack = jnp.stack(
        [jnp.tile(b.astype(jnp.float32), (1, _PACK)) for b in (b1, b2, b3)])  # (3,1,128)
    w4_bd = jnp.kron(eye, w4.astype(jnp.float32))                          # (128, 8)
    b4_bd = jnp.tile(b4.astype(jnp.float32), (1, _PACK))                   # (1, 8)

    weight_bytes = sum(int(a.size) * a.dtype.itemsize
                       for a in (w_stack, b_stack, w4_bd, b4_bd))
    cost = pl.CostEstimate(
        flops=2 * padded_B * (Din * H + 2 * H * H + H * Dout),
        transcendentals=padded_B * Dout,
        bytes_accessed=padded_B * Din * 4 + padded_B * Dout * 4 + weight_bytes,
    )

    def resident(arr):
        nd = arr.ndim
        return pl.BlockSpec(arr.shape, lambda i, _nd=nd: (0,) * _nd)

    out_packed = pl.pallas_call(
        generator_kernel,
        out_shape=jax.ShapeDtypeStruct((rows, _PACK * Dout), jnp.float32),
        grid_spec=pltpu.PrefetchScalarGridSpec(
            num_scalar_prefetch=0,
            grid=(grid,),
            in_specs=[
                pl.BlockSpec((tile_r, _PACK * Din), lambda i: (i, 0)),
                resident(w_stack), resident(b_stack),
                resident(w4_bd), resident(b4_bd),
            ],
            out_specs=pl.BlockSpec((tile_r, _PACK * Dout), lambda i: (i, 0)),
        ),
        compiler_params=pltpu.CompilerParams(
            dimension_semantics=("parallel",)),
        cost_estimate=cost,
    )(x, w_stack, b_stack, w4_bd, b4_bd)

    # (rows, 8) row-major is bit-identical to (padded_B, 2) row-major:
    # a free reshape replaces the old (Dout, B) -> (B, Dout) transpose pass.
    return out_packed.reshape(padded_B, Dout)[:B].astype(orig_dtype)


def init_params(key):
    """Mirrors nn.Linear's U(-1/sqrt(fan_in), +1/sqrt(fan_in)) init.

    Weights stored pre-transposed: (fan_in, fan_out). Biases as (1, fan_out).
    """
    dims = [(Dim_G_Input, Dim_Hidden),
            (Dim_Hidden, Dim_Hidden),
            (Dim_Hidden, Dim_Hidden),
            (Dim_Hidden, Dim_G_Output)]
    params = []
    for (fan_in, fan_out) in dims:
        key, kw, kb = jax.random.split(key, 3)
        bound = 1.0 / jnp.sqrt(fan_in)
        w = jax.random.uniform(kw, (fan_in, fan_out), jnp.float32, -bound, bound)
        b = jax.random.uniform(kb, (1, fan_out), jnp.float32, -bound, bound)
        params.append((w, b))
    return params


def generator_reference(noise, params):
    """Pure-JAX f32 reference of the PyTorch forward pass."""
    h = noise
    for i, (w, b) in enumerate(params):
        h = h @ w + b
        if i < len(params) - 1:
            h = jnp.maximum(h, 0.0)
        else:
            h = jnp.tanh(h)
    return h


if __name__ == "__main__":
    key = jax.random.PRNGKey(0)
    key, knoise = jax.random.split(key)
    BATCH = 64
    noise = jax.random.normal(knoise, (BATCH, Dim_G_Input), jnp.float32)
    params = init_params(key)

    out = generator_forward(noise, params)
    out = jax.block_until_ready(out)

    ref = generator_reference(noise, params)
    assert out.shape == (BATCH, Dim_G_Output)
    # All operands are f32; tolerance is loosened only because the TPU MXU's
    # default-precision f32 matmul may internally use bf16 passes.
    assert jnp.allclose(out, ref, atol=3e-2, rtol=3e-2), "mismatch vs reference"

    print("KERNEL_OK")
</pallas_src>

<mosaic_0001>
module attributes {stable_mosaic.version = 11 : i64} {
  func.func @generator_kernel(%arg0: i32, %arg1: memref<8x128xf32, #tpu.memory_space<vmem>>, %arg2: memref<3x128x128xf32, #tpu.memory_space<vmem>>, %arg3: memref<3x1x128xf32, #tpu.memory_space<vmem>>, %arg4: memref<128x8xf32, #tpu.memory_space<vmem>>, %arg5: memref<1x8xf32, #tpu.memory_space<vmem>>, %arg6: memref<8x8xf32, #tpu.memory_space<vmem>>) attributes {dimension_semantics = [#tpu.dimension_semantics<parallel>], iteration_bounds = array<i64: 2>, scalar_prefetch = 0 : i64, scratch_operands = 0 : i64, tpu.core_type = #tpu.core_type<tc>, window_params = [{transform_indices = @transform_0, window_bounds = array<i64: 8, 128>}, {pipeline_mode = #tpu.pipeline_mode<synchronous>, transform_indices = @transform_1, window_bounds = array<i64: 3, 128, 128>}, {pipeline_mode = #tpu.pipeline_mode<synchronous>, transform_indices = @transform_2, window_bounds = array<i64: 3, 1, 128>}, {pipeline_mode = #tpu.pipeline_mode<synchronous>, transform_indices = @transform_3, window_bounds = array<i64: 128, 8>}, {pipeline_mode = #tpu.pipeline_mode<synchronous>, transform_indices = @transform_4, window_bounds = array<i64: 1, 8>}, {transform_indices = @transform_5, window_bounds = array<i64: 8, 8>}]} {
    %c0 = arith.constant 0 : index
    %c0_0 = arith.constant 0 : index
    %0 = vector.load %arg1[%c0, %c0_0] : memref<8x128xf32, #tpu.memory_space<vmem>>, vector<8x128xf32>
    %c0_1 = arith.constant 0 : index
    %c0_2 = arith.constant 0 : index
    %c0_3 = arith.constant 0 : index
    %1 = vector.load %arg2[%c0_1, %c0_2, %c0_3] : memref<3x128x128xf32, #tpu.memory_space<vmem>>, vector<1x128x128xf32>
    %2 = vector.shape_cast %1 : vector<1x128x128xf32> to vector<128x128xf32>
    %cst = arith.constant dense<0.000000e+00> : vector<8x128xf32>
    %3 = tpu.matmul %0, %2, %cst {dimension_numbers = #tpu.dot_dimension_numbers<[1], [0], [0], [1], [0, 0, 1, 1], [], []>} : vector<8x128xf32>, vector<128x128xf32>, vector<8x128xf32> -> vector<8x128xf32>
    %c0_4 = arith.constant 0 : index
    %c0_5 = arith.constant 0 : index
    %c0_6 = arith.constant 0 : index
    %4 = vector.load %arg3[%c0_4, %c0_5, %c0_6] : memref<3x1x128xf32, #tpu.memory_space<vmem>>, vector<1x1x128xf32>
    %5 = vector.shape_cast %4 : vector<1x1x128xf32> to vector<1x128xf32>
    %6 = vector.broadcast %5 : vector<1x128xf32> to vector<8x128xf32>
    %7 = arith.addf %3, %6 : vector<8x128xf32>
    %cst_7 = arith.constant 0.000000e+00 : f32
    %8 = vector.broadcast %cst_7 : f32 to vector<8x128xf32>
    %9 = arith.maximumf %7, %8 : vector<8x128xf32>
    %c1 = arith.constant 1 : index
    %c0_8 = arith.constant 0 : index
    %c0_9 = arith.constant 0 : index
    %10 = vector.load %arg2[%c1, %c0_8, %c0_9] : memref<3x128x128xf32, #tpu.memory_space<vmem>>, vector<1x128x128xf32>
    %11 = vector.shape_cast %10 : vector<1x128x128xf32> to vector<128x128xf32>
    %cst_10 = arith.constant dense<0.000000e+00> : vector<8x128xf32>
    %12 = tpu.matmul %9, %11, %cst_10 {dimension_numbers = #tpu.dot_dimension_numbers<[1], [0], [0], [1], [0, 0, 1, 1], [], []>} : vector<8x128xf32>, vector<128x128xf32>, vector<8x128xf32> -> vector<8x128xf32>
    %c1_11 = arith.constant 1 : index
    %c0_12 = arith.constant 0 : index
    %c0_13 = arith.constant 0 : index
    %13 = vector.load %arg3[%c1_11, %c0_12, %c0_13] : memref<3x1x128xf32, #tpu.memory_space<vmem>>, vector<1x1x128xf32>
    %14 = vector.shape_cast %13 : vector<1x1x128xf32> to vector<1x128xf32>
    %15 = vector.broadcast %14 : vector<1x128xf32> to vector<8x128xf32>
    %16 = arith.addf %12, %15 : vector<8x128xf32>
    %cst_14 = arith.constant 0.000000e+00 : f32
    %17 = vector.broadcast %cst_14 : f32 to vector<8x128xf32>
    %18 = arith.maximumf %16, %17 : vector<8x128xf32>
    %c2 = arith.constant 2 : index
    %c0_15 = arith.constant 0 : index
    %c0_16 = arith.constant 0 : index
    %19 = vector.load %arg2[%c2, %c0_15, %c0_16] : memref<3x128x128xf32, #tpu.memory_space<vmem>>, vector<1x128x128xf32>
    %20 = vector.shape_cast %19 : vector<1x128x128xf32> to vector<128x128xf32>
    %cst_17 = arith.constant dense<0.000000e+00> : vector<8x128xf32>
    %21 = tpu.matmul %18, %20, %cst_17 {dimension_numbers = #tpu.dot_dimension_numbers<[1], [0], [0], [1], [0, 0, 1, 1], [], []>} : vector<8x128xf32>, vector<128x128xf32>, vector<8x128xf32> -> vector<8x128xf32>
    %c2_18 = arith.constant 2 : index
    %c0_19 = arith.constant 0 : index
    %c0_20 = arith.constant 0 : index
    %22 = vector.load %arg3[%c2_18, %c0_19, %c0_20] : memref<3x1x128xf32, #tpu.memory_space<vmem>>, vector<1x1x128xf32>
    %23 = vector.shape_cast %22 : vector<1x1x128xf32> to vector<1x128xf32>
    %24 = vector.broadcast %23 : vector<1x128xf32> to vector<8x128xf32>
    %25 = arith.addf %21, %24 : vector<8x128xf32>
    %cst_21 = arith.constant 0.000000e+00 : f32
    %26 = vector.broadcast %cst_21 : f32 to vector<8x128xf32>
    %27 = arith.maximumf %25, %26 : vector<8x128xf32>
    %c0_22 = arith.constant 0 : index
    %c0_23 = arith.constant 0 : index
    %28 = vector.load %arg4[%c0_22, %c0_23] : memref<128x8xf32, #tpu.memory_space<vmem>>, vector<128x8xf32>
    %cst_24 = arith.constant dense<0.000000e+00> : vector<8x8xf32>
    %29 = tpu.matmul %27, %28, %cst_24 {dimension_numbers = #tpu.dot_dimension_numbers<[1], [0], [0], [1], [0, 0, 1, 1], [], []>} : vector<8x128xf32>, vector<128x8xf32>, vector<8x8xf32> -> vector<8x8xf32>
    %c0_25 = arith.constant 0 : index
    %c0_26 = arith.constant 0 : index
    %30 = vector.load %arg5[%c0_25, %c0_26] : memref<1x8xf32, #tpu.memory_space<vmem>>, vector<1x8xf32>
    %31 = vector.broadcast %30 : vector<1x8xf32> to vector<8x8xf32>
    %32 = arith.addf %29, %31 : vector<8x8xf32>
    %33 = math.tanh %32 : vector<8x8xf32>
    %c0_27 = arith.constant 0 : index
    %c0_28 = arith.constant 0 : index
    %34 = vector.load %arg6[%c0_27, %c0_28] : memref<8x8xf32, #tpu.memory_space<vmem>>, vector<8x8xf32>
    tpu.vector_store %arg6[%c0_27, %c0_28], %33 {strides = array<i32>} : memref<8x8xf32, #tpu.memory_space<vmem>>, vector<8x8xf32>,
    return
  }
  func.func @transform_0(%arg0: i32) -> (i32, i32) {
    %c0_i32 = arith.constant 0 : i32
    %c0_i32_0 = arith.constant 0 : i32
    return %arg0, %c0_i32 : i32, i32
  }
  func.func @transform_1(%arg0: i32) -> (i32, i32, i32) {
    %c0_i32 = arith.constant 0 : i32
    %c0_i32_0 = arith.constant 0 : i32
    %c0_i32_1 = arith.constant 0 : i32
    %c0_i32_2 = arith.constant 0 : i32
    return %c0_i32, %c0_i32_0, %c0_i32_1 : i32, i32, i32
  }
  func.func @transform_2(%arg0: i32) -> (i32, i32, i32) {
    %c0_i32 = arith.constant 0 : i32
    %c0_i32_0 = arith.constant 0 : i32
    %c0_i32_1 = arith.constant 0 : i32
    %c0_i32_2 = arith.constant 0 : i32
    return %c0_i32, %c0_i32_0, %c0_i32_1 : i32, i32, i32
  }
  func.func @transform_3(%arg0: i32) -> (i32, i32) {
    %c0_i32 = arith.constant 0 : i32
    %c0_i32_0 = arith.constant 0 : i32
    %c0_i32_1 = arith.constant 0 : i32
    return %c0_i32, %c0_i32_0 : i32, i32
  }
  func.func @transform_4(%arg0: i32) -> (i32, i32) {
    %c0_i32 = arith.constant 0 : i32
    %c0_i32_0 = arith.constant 0 : i32
    %c0_i32_1 = arith.constant 0 : i32
    return %c0_i32, %c0_i32_0 : i32, i32
  }
  func.func @transform_5(%arg0: i32) -> (i32, i32) {
    %c0_i32 = arith.constant 0 : i32
    %c0_i32_0 = arith.constant 0 : i32
    return %arg0, %c0_i32 : i32, i32
  }
}

</mosaic_0001>

<bundles_post_ra>
// kernel: generator_forward.1
= control target key start
LH: loop header
LB: loop body
LE: loop exit
PB: predicated region body
PF: predicated region fallthrough
CT: control target
= control target key end

     0   :  { %s1061_s18 = smov 0   ;;  %s1333_s0 = inlined_call_operand.vmem [shape: f32[16,128], index: 0, kind: input, shape index: {}]   ;;  %s1334_s1 = inlined_call_operand.vmem [shape: f32[3,128,128], index: 1, kind: input, shape index: {}]   ;;  %s1335_s2 = inlined_call_operand.vmem [shape: f32[3,1,128], index: 2, kind: input, shape index: {}]   ;;  %s1336_s3 = inlined_call_operand.vmem [shape: f32[128,8], index: 3, kind: input, shape index: {}]   ;;  %s1337_s4 = inlined_call_operand.vmem [shape: f32[1,8], index: 4, kind: input, shape index: {}]   ;;  %s1338_s5 = inlined_call_operand.vmem [shape: f32[16,8], index: 5, kind: output, shape index: {}]  }
   0x1 LB: > { %s656_s19 = sadd.s32 4294967295, %s1026_s18   ;;  %p660_p0 = scmp.ge.s32.totalorder %s1026_s18, 1  ;;  %s1026_s18 = sphi %s1061_s18, %s15_s18  }
   0x2   : > { %p186_p1 = scmp.lt.s32.totalorder %s1026_s18, 3 }
   0x4   : > { %p187_p2 = pnand %p660_p0, %p186_p1 }
   0x5   : > { %v221_v0 = vld [vmem:[%s1334_s1] sm:$0xff] (!%p187_p2)  ;;  %v222_v1 = vld [vmem:[%s1334_s1 + $0x8] sm:$0xff] (!%p187_p2)  ;;  %v223_v2 = vld [vmem:[%s1334_s1 + $0x10] sm:$0xff] (!%p187_p2)  ;;  %v1028_v3 = vmov (!%p187_p2), 0.0|0.0   ;;  %vm1029_vm0 = vmmov (!%p187_p2), 0   ;;  %v1030_v6 = vmov (!%p187_p2), 0.0  }
   0x6   : > { %190 = sbr.rel (%p187_p2) target bundleno = 913 (0x391), region = 40  ;;  %911 = vmatprep.subr.bf16.mxu0 (!%p187_p2), %v1028_v3  ;;  %v912_v4 = vpack.c.bf16 (!%p187_p2), %v222_v1, %v221_v0  ;;  %v224_v5 = vld [vmem:[%s1334_s1 + $0x18] sm:$0xff] (!%p187_p2)  ;;  %803 = vmatprep.mubr.msk.f32.mxu0 (!%p187_p2), %vm1029_vm0, %v1030_v6  ;;  %v225_v8 = vld [vmem:[%s1334_s1 + $0x20] sm:$0xff] (!%p187_p2)  ;;  %v226_v9 = vld [vmem:[%s1334_s1 + $0x28] sm:$0xff] (!%p187_p2)  ;;  %p212_p3 = scmp.lt.s32.totalorder (!%p187_p2), %s656_s19, 1  ;;  %vm601_vm1 = vcmask (!%p187_p2), 64512  }
   0x7   : > { %935 = vmatprep.subr.bf16.mxu1 (!%p187_p2), %v1028_v3  ;;  %838 = vmatprep.mubr.msk.f32.mxu1 (!%p187_p2), %vm1029_vm0, %v1030_v6  ;;  %v915_v7 = vpack.c.bf16 (!%p187_p2), %v224_v5, %v223_v2  ;;  %v664_v10 = vld [vmem:[%s1334_s1 + $0x80] sm:$0xff] (!%p187_p2)  ;;  %v665_v11 = vld [vmem:[%s1334_s1 + $0x88] sm:$0xff] (!%p187_p2)  ;;  %v666_v13 = vld [vmem:[%s1334_s1 + $0x90] sm:$0xff] (!%p187_p2)  ;;  %v918_v15 = vpack.c.bf16 (!%p187_p2), %v226_v9, %v225_v8 }
   0x8   : > { %913 = vmatpush3.bf16.msra.mxu0 (!%p187_p2), %v912_v4  ;;  %v936_v12 = vpack.c.bf16 (!%p187_p2), %v665_v11, %v664_v10  ;;  %v667_v14 = vld [vmem:[%s1334_s1 + $0x98] sm:$0xff] (!%p187_p2)  ;;  %v227_v16 = vld [vmem:[%s1334_s1 + $0x30] sm:$0xff] (!%p187_p2)  ;;  %v668_v19 = vld [vmem:[%s1334_s1 + $0xa0] sm:$0xff] (!%p187_p2) }
   0x9   : > { %914 = vmatprep.subr.bf16.mxu0 (!%p187_p2), %v1028_v3  ;;  %v228_v17 = vld [vmem:[%s1334_s1 + $0x38] sm:$0xff] (!%p187_p2)  ;;  %v939_v18 = vpack.c.bf16 (!%p187_p2), %v667_v14, %v666_v13  ;;  %v669_v20 = vld [vmem:[%s1334_s1 + $0xa8] sm:$0xff] (!%p187_p2)  ;;  %v229_v22 = vld [vmem:[%s1334_s1 + $0x40] sm:$0xff] (!%p187_p2) }
   0xa   : > { %937 = vmatpush3.bf16.msra.mxu1 (!%p187_p2), %v936_v12  ;;  %v921_v21 = vpack.c.bf16 (!%p187_p2), %v228_v17, %v227_v16  ;;  %v230_v23 = vld [vmem:[%s1334_s1 + $0x48] sm:$0xff] (!%p187_p2)  ;;  %v942_v24 = vpack.c.bf16 (!%p187_p2), %v669_v20, %v668_v19  ;;  %v670_v25 = vld [vmem:[%s1334_s1 + $0xb0] sm:$0xff] (!%p187_p2)  ;;  %v671_v26 = vld [vmem:[%s1334_s1 + $0xb8] sm:$0xff] (!%p187_p2) }
   0xb   : > { %938 = vmatprep.subr.bf16.mxu1 (!%p187_p2), %v1028_v3  ;;  %v924_v27 = vpack.c.bf16 (!%p187_p2), %v230_v23, %v229_v22  ;;  %v231_v28 = vld [vmem:[%s1334_s1 + $0x50] sm:$0xff] (!%p187_p2)  ;;  %v232_v29 = vld [vmem:[%s1334_s1 + $0x58] sm:$0xff] (!%p187_p2)  ;;  %v945_v30 = vpack.c.bf16 (!%p187_p2), %v671_v26, %v670_v25  ;;  %v672_v31 = vld [vmem:[%s1334_s1 + $0xc0] sm:$0xff] (!%p187_p2) }
   0xc   : > { %916 = vmatpush3.bf16.msra.mxu0 (!%p187_p2), %v915_v7  ;;  %v673_v32 = vld [vmem:[%s1334_s1 + $0xc8] sm:$0xff] (!%p187_p2)  ;;  %v927_v33 = vpack.c.bf16 (!%p187_p2), %v232_v29, %v231_v28  ;;  %v233_v34 = vld [vmem:[%s1334_s1 + $0x60] sm:$0xff] (!%p187_p2)  ;;  %v674_v37 = vld [vmem:[%s1334_s1 + $0xd0] sm:$0xff] (!%p187_p2) }
   0xd   : > { %917 = vmatprep.subr.bf16.mxu0 %v1028_v3  ;;  %v234_v35 = vld [vmem:[%s1334_s1 + $0x68] sm:$0xff]  ;;  %v948_v36 = vpack.c.bf16 %v673_v32, %v672_v31  ;;  %s1340_s19 = smov (!%p212_p3, %s656_s19), 1  ;;  %v675_v38 = vld [vmem:[%s1334_s1 + $0xd8] sm:$0xff]  ;;  %v235_v40 = vld [vmem:[%s1334_s1 + $0x70] sm:$0xff] }
   0xe   : > { %940 = vmatpush3.bf16.msra.mxu1 %v939_v18  ;;  %v930_v39 = vpack.c.bf16 %v234_v35, %v233_v34  ;;  %v236_v41 = vld [vmem:[%s1334_s1 + $0x78] sm:$0xff]  ;;  %v951_v42 = vpack.c.bf16 %v675_v38, %v674_v37  ;;  %s661_s30 = sshll.u32 %s1340_s19, 3  ;;  %v676_v43 = vld [vmem:[%s1334_s1 + $0xe0] sm:$0xff]  ;;  %v677_v44 = vld [vmem:[%s1334_s1 + $0xe8] sm:$0xff] }
   0xf   : > { %941 = vmatprep.subr.bf16.mxu1 %v1028_v3  ;;  %v933_v45 = vpack.c.bf16 %v236_v41, %v235_v40  ;;  %s215_s12 = scalar_lea.vmem %s1333_s0, %s661_s30  ;;  %v954_v46 = vpack.c.bf16 %v677_v44, %v676_v43  ;;  %v678_v48 = vld [vmem:[%s1334_s1 + $0xf0] sm:$0xff]  ;;  %v679_v49 = vld [vmem:[%s1334_s1 + $0xf8] sm:$0xff]  ;;  %v682_v51 = vld [vmem:[%s1334_s1 + $0x100] sm:$0xff]  ;;  %s219_s27 = scalar_lea.vmem %s1338_s5, %s661_s30 }
  0x10   : > { %919 = vmatpush3.bf16.msra.mxu0 %v918_v15  ;;  %v220_v47 = vld [vmem:[%s215_s12] sm:$0xff]  ;;  %v957_v50 = vpack.c.bf16 %v679_v49, %v678_v48  ;;  %v683_v52 = vld [vmem:[%s1334_s1 + $0x108] sm:$0xff]  ;;  %v684_v53 = vld [vmem:[%s1334_s1 + $0x110] sm:$0xff] }
  0x11   : > { %920 = vmatprep.subr.bf16.mxu0 %v1028_v3  ;;  %v960_v54 = vpack.c.bf16 %v683_v52, %v682_v51  ;;  %v685_v55 = vld [vmem:[%s1334_s1 + $0x118] sm:$0xff]  ;;  %v686_v57 = vld [vmem:[%s1334_s1 + $0x120] sm:$0xff]  ;;  %v687_v58 = vld [vmem:[%s1334_s1 + $0x128] sm:$0xff] }
  0x12   : > { %943 = vmatpush3.bf16.msra.mxu1 %v942_v24  ;;  %v963_v56 = vpack.c.bf16 %v685_v55, %v684_v53  ;;  %v966_v59 = vpack.c.bf16 %v687_v58, %v686_v57  ;;  %v688_v60 = vld [vmem:[%s1334_s1 + $0x130] sm:$0xff]  ;;  %v689_v61 = vld [vmem:[%s1334_s1 + $0x138] sm:$0xff]  ;;  %v690_v63 = vld [vmem:[%s1334_s1 + $0x140] sm:$0xff] }
  0x13   : > { %944 = vmatprep.subr.bf16.mxu1 %v1028_v3  ;;  %v969_v62 = vpack.c.bf16 %v689_v61, %v688_v60  ;;  %v691_v0 = vld [vmem:[%s1334_s1 + $0x148] sm:$0xff]  ;;  %v692_v2 = vld [vmem:[%s1334_s1 + $0x150] sm:$0xff]  ;;  %v693_v4 = vld [vmem:[%s1334_s1 + $0x158] sm:$0xff] }
  0x14   : > { %922 = vmatpush3.bf16.msra.mxu0 %v921_v21  ;;  %v972_v1 = vpack.c.bf16 %v691_v0, %v690_v63  ;;  %v975_v5 = vpack.c.bf16 %v693_v4, %v692_v2  ;;  %v694_v7 = vld [vmem:[%s1334_s1 + $0x160] sm:$0xff]  ;;  %v695_v8 = vld [vmem:[%s1334_s1 + $0x168] sm:$0xff]  ;;  %v696_v15 = vld [vmem:[%s1334_s1 + $0x170] sm:$0xff] }
  0x15   : > { %923 = vmatprep.subr.bf16.mxu0 %v1028_v3  ;;  %v978_v9 = vpack.c.bf16 %v695_v8, %v694_v7  ;;  %v663_v10 = vld [vmem:[%s1335_s2] ss:$0 sm:$0xff]  ;;  %v697_v16 = vld [vmem:[%s1334_s1 + $0x178] sm:$0xff]  ;;  %v508_v19 = vld [vmem:[%s1336_s3 + $0x8] sm:$0xff] }
  0x16   : > { %946 = vmatpush3.bf16.msra.mxu1 %v945_v30  ;;  %v981_v17 = vpack.c.bf16 %v697_v16, %v696_v15  ;;  %v507_v18 = vld [vmem:[%s1336_s3] sm:$0xff]  ;;  %v510_v21 = vld [vmem:[%s1336_s3 + $0x18] sm:$0xff]  ;;  %v512_v24 = vld [vmem:[%s1336_s3 + $0x28] sm:$0xff] }
  0x17   : > { %947 = vmatprep.subr.bf16.mxu1 %v1028_v3  ;;  %v984_v20 = vpack.c.bf16 %v508_v19, %v507_v18  ;;  %v511_v23 = vld [vmem:[%s1336_s3 + $0x20] sm:$0xff]  ;;  %v513_v26 = vld [vmem:[%s1336_s3 + $0x30] sm:$0xff]  ;;  %v516_v30 = vld [vmem:[%s1336_s3 + $0x48] sm:$0xff] }
  0x18   : > { %925 = vmatpush3.bf16.msra.mxu0 %v924_v27  ;;  %v990_v25 = vpack.c.bf16 %v512_v24, %v511_v23  ;;  %v514_v27 = vld [vmem:[%s1336_s3 + $0x38] sm:$0xff]  ;;  %v515_v29 = vld [vmem:[%s1336_s3 + $0x40] sm:$0xff]  ;;  %v517_v32 = vld [vmem:[%s1336_s3 + $0x50] sm:$0xff] }
  0x19   : > { %926 = vmatprep.subr.bf16.mxu0 %v1028_v3  ;;  %v993_v28 = vpack.c.bf16 %v514_v27, %v513_v26  ;;  %v996_v31 = vpack.c.bf16 %v516_v30, %v515_v29  ;;  %v519_v35 = vld [vmem:[%s1336_s3 + $0x60] sm:$0xff]  ;;  %v521_v43 = vld [vmem:[%s1336_s3 + $0x70] sm:$0xff]  ;;  %v522_v44 = vld [vmem:[%s1336_s3 + $0x78] sm:$0xff] }
  0x1a   : > { %949 = vmatpush3.bf16.msra.mxu1 %v948_v36  ;;  %v520_v36 = vld [vmem:[%s1336_s3 + $0x68] sm:$0xff]  ;;  %v681_v38 = vld [vmem:[%s1335_s2 + $0x1] ss:$0 sm:$0xff] }
  0x1b   : > { %950 = vmatprep.subr.bf16.mxu1 %v1028_v3  ;;  %v1002_v37 = vpack.c.bf16 %v520_v36, %v519_v35 }
  0x1c   : > { %928 = vmatpush3.bf16.msra.mxu0 %v927_v33  ;;  %v518_v33 = vld [vmem:[%s1336_s3 + $0x58] sm:$0xff] }
  0x1d   : > { %929 = vmatprep.subr.bf16.mxu0 %v1028_v3  ;;  %v999_v34 = vpack.c.bf16 %v518_v33, %v517_v32 }
  0x1e   : > { %952 = vmatpush3.bf16.msra.mxu1 %v951_v42 }
  0x1f   : > { %953 = vmatprep.subr.bf16.mxu1 %v1028_v3 }
  0x20   : > { %931 = vmatpush3.bf16.msra.mxu0 %v930_v39 }
  0x21   : > { %932 = vmatprep.subr.bf16.mxu0 %v1028_v3 }
  0x22   : > { %955 = vmatpush3.bf16.msra.mxu1 %v954_v46 }
  0x23   : > { %956 = vmatprep.subr.bf16.mxu1 %v1028_v3 }
  0x24   : > { %934 = vmatpush3.bf16.msra.mxu0 %v933_v45  ;;  %v1005_v45 = vpack.c.bf16 %v522_v44, %v521_v43 }
  0x25   : > { %959 = vmatprep.subr.bf16.mxu0 %v1028_v3 }
  0x26   : > { %958 = vmatpush3.bf16.msra.mxu1 %v957_v50  ;;  %v700_v50 = vld [vmem:[%s1337_s4] ss:$0 sm:$0xff] }
  0x27   : > { %804 = vmatmul.mubr.f32.vlgmr.msra.gmra.mrb[0].mxu0 %v220_v47  ;;  %983 = vmatprep.subr.bf16.mxu1 %v1028_v3 }
  0x28   : > { %873 = vmatprep.mubr.msk.f32.mxu0 %vm1029_vm0, %v1030_v6  ;;  %961 = vmatpush3.bf16.msra.mxu0 %v960_v54 }
  0x29   : > { %962 = vmatprep.subr.bf16.mxu0 %v1028_v3 }
  0x2c   : > { %964 = vmatpush3.bf16.msra.mxu0 %v963_v56 }
  0x2d   : > { %965 = vmatprep.subr.bf16.mxu0 %v1028_v3 }
  0x30   : > { %967 = vmatpush3.bf16.msra.mxu0 %v966_v59 }
  0x31   : > { %968 = vmatprep.subr.bf16.mxu0 %v1028_v3 }
  0x34   : > { %970 = vmatpush3.bf16.msra.mxu0 %v969_v62 }
  0x35   : > { %971 = vmatprep.subr.bf16.mxu0 %v1028_v3 }
  0x38   : > { %973 = vmatpush3.bf16.msra.mxu0 %v972_v1 }
  0x39   : > { %974 = vmatprep.subr.bf16.mxu0 %v1028_v3 }
  0x3c   : > { %976 = vmatpush3.bf16.msra.mxu0 %v975_v5 }
  0x3d   : > { %977 = vmatprep.subr.bf16.mxu0 %v1028_v3 }
  0x40   : > { %979 = vmatpush3.bf16.msra.mxu0 %v978_v9 }
  0x41   : > { %980 = vmatprep.subr.bf16.mxu0 %v1028_v3 }
  0x44   : > { %982 = vmatpush3.bf16.msra.mxu0 %v981_v17 }
  0xfa   : > { %v310_v11 = vpop.f32.mrb[0].mxu0 }
  0xfb   : > { %v311_v12 = vadd.f32 %v663_v10, %v310_v11  ;;  %v805_v13 = vpop.f32.mrb[1].mxu0 }
  0xfd   : > { %v314_v14 = vmax.f32 %v311_v12, 0.0 }
  0xff   : > { %839 = vmatmul.mubr.f32.vlgmr.msra.gmra.mrb[0].mxu1 %v314_v14 }
 0x100   : > { %908 = vmatprep.mubr.msk.f32.mxu1 %vm1029_vm0, %v1030_v6  ;;  %v509_v6 = vld [vmem:[%s1336_s3 + $0x10] sm:$0xff]  ;;  %985 = vmatpush3.bf16.msra.mxu1 %v984_v20 }
 0x101   : > { %v987_v22 = vpack.c.bf16 %v510_v21, %v509_v6  ;;  %986 = vmatprep.subr.bf16.mxu1 %v1028_v3 }
 0x104   : > { %988 = vmatpush3.bf16.msra.mxu1 %v987_v22 }
 0x105   : > { %989 = vmatprep.subr.bf16.mxu1 %v1028_v3 }
 0x108   : > { %991 = vmatpush3.bf16.msra.mxu1 %v990_v25 }
 0x109   : > { %992 = vmatprep.subr.bf16.mxu1 %v1028_v3 }
 0x10c   : > { %994 = vmatpush3.bf16.msra.mxu1 %v993_v28 }
 0x10d   : > { %995 = vmatprep.subr.bf16.mxu1 %v1028_v3 }
 0x110   : > { %997 = vmatpush3.bf16.msra.mxu1 %v996_v31 }
 0x111   : > { %998 = vmatprep.subr.bf16.mxu1 %v1028_v3 }
 0x114   : > { %1000 = vmatpush3.bf16.msra.mxu1 %v999_v34 }
 0x115   : > { %1001 = vmatprep.subr.bf16.mxu1 %v1028_v3 }
 0x118   : > { %1003 = vmatpush3.bf16.msra.mxu1 %v1002_v37 }
 0x119   : > { %1004 = vmatprep.subr.bf16.mxu1 %v1028_v3  ;;  %v699_v3 = vld [vmem:[%s1335_s2 + $0x2] ss:$0 sm:$0xff] }
 0x11c   : > { %1006 = vmatpush3.bf16.msra.mxu1 %v1005_v45 }
 0x1d2   : > { %v406_v39 = vpop.f32.mrb[0].mxu1 }
 0x1d3   : > { %v407_v40 = vadd.f32 %v681_v38, %v406_v39  ;;  %v840_v41 = vpop.f32.mrb[1].mxu1 }
 0x1d5   : > { %v410_v42 = vmax.f32 %v407_v40, 0.0 }
 0x1d7   : > { %874 = vmatmul.mubr.f32.vlgmr.msra.gmra.mrb[2].mxu0 %v410_v42 }
 0x2aa   : > { %v502_v46 = vpop.f32.mrb[2].mxu0 }
 0x2ab   : > { %v503_v47 = vadd.f32 %v699_v3, %v502_v46  ;;  %v875_v48 = vpop.f32.mrb[3].mxu0 }
 0x2ad   : > { %v506_v49 = vmax.f32 %v503_v47, 0.0 }
 0x2af   : > { %909 = vmatmul.mubr.f32.vlgmr.msra.gmra.mrb[2].mxu1 %v506_v49 }
 0x382   : > { %v596_v51 = vpop.f32.mrb[2].mxu1 }
 0x383   : > { %v597_v52 = vadd.f32 %v700_v50, %v596_v51  ;;  %v910_v53 = vpop.f32.mrb[3].mxu1 }
 0x385   : > { %1018 = vtanh.f32 %v597_v52 }
 0x38f   : > { %v1019_v54 = vpop.eup %1018 }
 0x390   : > { %602 = vst.msk [vmem:[%s219_s27] sm:$0xff] %vm601_vm1, %v1019_v54 }
 0x391 PF: > { %s15_s18 = sadd.s32 1, %s1026_s18  }
 0x392   : > { %p12_p4 = scmp.ge.s32.totalorder %s15_s18, 4  }
 0x394   :  { %14 = sbr.rel (!%p12_p4) target bundleno = 1 (0x1), region = 74 }

</bundles_post_ra>
